<compile_context>
chip_gen: v7x
topology: tpu7x:2x2x1
jax: 0.10.0
libtpu: 0.0.40
codegen_flags: <defaults>
</compile_context>

<pallas_src>
import math
import numpy as np
import jax
import jax.numpy as jnp
from jax import lax
from jax.experimental import pallas as pl
from jax.experimental.pallas import tpu as pltpu

# ----------------------------- config ---------------------------------------
CFG = dict(
    hidden_dim=32,
    num_heads=4,
    dropout_rate=0.0,
    num_t=2,
    patch_size=4,
    train_img_size=16,
    eval_img_size=16,
)
HID = CFG["hidden_dim"]
NH = CFG["num_heads"]
HD = HID // NH                      # head_dim = 8
HD2 = HD // 2
NUM_T = CFG["num_t"]
L1D = CFG["train_img_size"] // CFG["patch_size"]   # 4
SEQ = L1D * NUM_T                   # sequence length on the 1D-spatial path = 8
BATCH = 2
EPS = 1e-5
ROPE_BASE = 10000.0
NEG = -1e30


# ----------------------------- kernel ---------------------------------------
def make_encoder_kernel(seq, num_heads, head_dim):
    D = num_heads * head_dim            # 32
    half = D // 2                       # 16 (width of the even / odd q or k block)
    nh_rows = num_heads * seq           # 32
    # row offsets inside the packed f32 constant slab
    CS0 = 8                             # rope cos rows
    SN0 = 16                            # rope sin rows
    QM0 = 24                            # head mask for big-Q
    AM0 = QM0 + nh_rows                 # additive causal mask
    OM0 = AM0 + nh_rows                 # head-output scatter mask

    def kernel(x_ref, w_ref, c_ref, o_ref):
        f32, bf16 = jnp.float32, jnp.bfloat16

        x = x_ref[...]                                             # (seq, D) f32

        # ---- fused QKV projection into a lane-dense (seq, 4D=128) slab:
        #      [q_even | k_even | v | q_odd | k_odd | zero-pad]
        y = jnp.dot(x.astype(bf16), w_ref[:, 0:4 * D],
                    preferred_element_type=f32) + c_ref[0:1, :]

        # ---- fused (spatial+temporal) rotary for q and k, identity for v:
        # one native 128-lane roll by 2D=64 pairs each even block with its odd block;
        # cos=1 / sin=0 over the v columns and 0 over the pad columns.
        # 1/sqrt(head_dim) is folded into the q columns of cos/sin (f32).
        y = y * c_ref[CS0:CS0 + seq, :] + \
            pltpu.roll(y, shift=2 * D, axis=1) * c_ref[SN0:SN0 + seq, :]

        q = jnp.concatenate([y[:, 0:half], y[:, 2 * D:2 * D + half]], axis=-1)   # (seq, D)
        k = jnp.concatenate([y[:, half:D], y[:, 2 * D + half:3 * D]], axis=-1)   # (seq, D)
        v = y[:, D:2 * D]                                                        # (seq, D)

        # ---- attention for all heads with two MXU pushes:
        # tile q per head along sublanes, mask to that head's columns (precomputed
        # constant mask), contract against k in A@B^T form (no explicit transpose).
        q_big = jnp.concatenate([q] * num_heads, axis=0) * c_ref[QM0:QM0 + nh_rows, 0:D]
        s = lax.dot_general(q_big.astype(bf16), k.astype(bf16),
                            dimension_numbers=(((1,), (1,)), ((), ())),
                            preferred_element_type=f32)             # (NH*seq, seq)
        s = s + c_ref[AM0:AM0 + nh_rows, 0:seq]                     # additive causal mask

        m = jnp.max(s, axis=-1, keepdims=True)
        e = jnp.exp(s - m)
        p = e * pl.reciprocal(jnp.sum(e, axis=-1, keepdims=True), approx=True)

        pv = jnp.dot(p.astype(bf16), v.astype(bf16),
                     preferred_element_type=f32)                    # (NH*seq, D)
        pv = pv * c_ref[OM0:OM0 + nh_rows, 0:D]                     # keep head's own cols
        attn = pv[0:seq]
        for h in range(1, num_heads):                               # static 3-add scatter
            attn = attn + pv[h * seq:(h + 1) * seq]

        # ---- swish + output projection + residual (dropout rate 0 -> identity)
        attn = attn * jax.nn.sigmoid(attn)
        attn = jnp.dot(attn.astype(bf16), w_ref[:, 12 * D:13 * D],
                       preferred_element_type=f32) + c_ref[1:2, 0:D]
        h1 = attn + x

        def layer_norm(z, g, b):
            mu = jnp.mean(z, axis=-1, keepdims=True)
            var = jnp.mean((z - mu) ** 2, axis=-1, keepdims=True)
            return (z - mu) * lax.rsqrt(var + EPS) * g + b

        h1n = layer_norm(h1, c_ref[2:3, 0:D], c_ref[3:4, 0:D])

        # ---- FFN (4x expand, swish) + residual + LayerNorm2
        # W2 is stored transposed so it packs into the (32, X) weight slab; the A@B^T
        # dot_general is the same pattern already used for the score matmul.
        ff = jnp.dot(h1n.astype(bf16), w_ref[:, 4 * D:8 * D],
                     preferred_element_type=f32) + c_ref[4:5, :]
        ff = ff * jax.nn.sigmoid(ff)
        ff = lax.dot_general(ff.astype(bf16), w_ref[:, 8 * D:12 * D],
                             dimension_numbers=(((1,), (1,)), ((), ())),
                             preferred_element_type=f32) + c_ref[5:6, 0:D]
        h2 = ff + h1n
        o_ref[...] = layer_norm(h2, c_ref[6:7, 0:D], c_ref[7:8, 0:D])

    return kernel


def encoder_layer_pallas(x, kp):
    """x: (B, L, D) float32.  kp: dict with packed 'w' (bf16) and 'c' (f32) slabs."""
    B, L, D = x.shape
    kernel = make_encoder_kernel(L, NH, HD)
    out2d = pl.pallas_call(
        kernel,
        out_shape=jax.ShapeDtypeStruct((B * L, D), jnp.float32),
        grid=(B,),
        in_specs=[
            pl.BlockSpec((L, D), lambda b: (b, 0)),           # this batch's rows
            pl.BlockSpec(kp["w"].shape, lambda b: (0, 0)),    # weights: DMA'd once
            pl.BlockSpec(kp["c"].shape, lambda b: (0, 0)),    # constants: DMA'd once
        ],
        out_specs=pl.BlockSpec((L, D), lambda b: (b, 0)),
        compiler_params=pltpu.CompilerParams(
            dimension_semantics=("parallel",)),                # both TCs on v7x
    )(x.reshape(B * L, D), kp["w"], kp["c"])
    return out2d.reshape(B, L, D)


# ----------------------------- reference (plain JAX, mirrors PyTorch) -------
def reference(x, p):
    B, L, H = x.shape
    Lsp = L // NUM_T
    y = x @ p["W_full"] + p["b_full"]                       # (B, L, 3H)
    y = y.reshape(B, L, NH, 3 * HD)                         # '(n h)' split, then chunk(3)
    q, k, v = y[..., :HD], y[..., HD:2 * HD], y[..., 2 * HD:]
    q = jnp.transpose(q, (0, 2, 1, 3))                      # (B, n, L, hd)
    k = jnp.transpose(k, (0, 2, 1, 3))
    v = jnp.transpose(v, (0, 2, 1, 3))

    inv_freq = 1.0 / (ROPE_BASE ** (jnp.arange(0, HD, 2, dtype=jnp.float32) / HD))
    ang_sp = jnp.arange(Lsp, dtype=jnp.float32)[:, None] * inv_freq
    ang_t = jnp.arange(NUM_T, dtype=jnp.float32)[:, None] * inv_freq

    def rope(z, ang):                                       # positions on axis -2, interleaved pairs
        ze, zo = z[..., 0::2], z[..., 1::2]
        c, s = jnp.cos(ang), jnp.sin(ang)
        ye = ze * c - zo * s
        yo = ze * s + zo * c
        return jnp.stack([ye, yo], axis=-1).reshape(z.shape)

    qs = rope(q.reshape(B, NH, NUM_T, Lsp, HD), ang_sp)     # spatial RoPE
    ks = rope(k.reshape(B, NH, NUM_T, Lsp, HD), ang_sp)
    qt = rope(jnp.transpose(qs, (0, 1, 3, 2, 4)), ang_t)    # temporal RoPE
    kt = rope(jnp.transpose(ks, (0, 1, 3, 2, 4)), ang_t)
    q = jnp.transpose(qt, (0, 1, 3, 2, 4)).reshape(B, NH, L, HD)
    k = jnp.transpose(kt, (0, 1, 3, 2, 4)).reshape(B, NH, L, HD)

    scores = jnp.einsum("bnld,bnmd->bnlm", q, k) / math.sqrt(HD)
    r = jnp.arange(L)[:, None]
    c = jnp.arange(L)[None, :]
    scores = scores + jnp.where(c <= r, 0.0, jnp.finfo(jnp.float32).min)
    attn = jax.nn.softmax(scores, axis=-1)
    out = jnp.einsum("bnlm,bnmd->bnld", attn, v)
    out = jnp.transpose(out, (0, 2, 1, 3)).reshape(B, L, H)
    out = out * jax.nn.sigmoid(out)
    out = out @ p["Wo"] + p["bo"]

    h1 = out + x

    def ln(z, g, b):
        mu = jnp.mean(z, -1, keepdims=True)
        var = jnp.mean((z - mu) ** 2, -1, keepdims=True)
        return (z - mu) * lax.rsqrt(var + EPS) * g + b

    h1n = ln(h1, p["g1"], p["be1"])
    ff = h1n @ p["W1"] + p["b1"]
    ff = ff * jax.nn.sigmoid(ff)
    ff = ff @ p["W2"] + p["b2"]
    return ln(ff + h1n, p["g2"], p["be2"])


# ----------------------------- parameter construction ------------------------
def build_params():
    key = jax.random.PRNGKey(0)
    ks = jax.random.split(key, 12)

    def rnd(k, shape, scale=0.05):
        return (scale * jax.random.normal(k, shape)).astype(jnp.float32)

    p = dict(
        W_full=rnd(ks[0], (HID, 3 * HID)),
        b_full=rnd(ks[1], (3 * HID,)),
        Wo=rnd(ks[2], (HID, HID)),
        bo=rnd(ks[3], (HID,)),
        W1=rnd(ks[4], (HID, 4 * HID)),
        b1=rnd(ks[5], (4 * HID,)),
        W2=rnd(ks[6], (4 * HID, HID)),
        b2=rnd(ks[7], (HID,)),
        g1=jnp.ones((HID,), jnp.float32),
        be1=jnp.zeros((HID,), jnp.float32),
        g2=jnp.ones((HID,), jnp.float32),
        be2=jnp.zeros((HID,), jnp.float32),
    )
    x = jax.random.normal(ks[8], (BATCH, SEQ, HID), jnp.float32)
    return x, p


def build_kernel_params(p):
    """Host-side packing into exactly two parameter slabs.

    Weight slab (bf16, 32 x 512):  [Wqkv(128) | W1(128) | W2^T(128) | Wo padded(128)]
      Wqkv column layout: [q_even(16) | k_even(16) | v(32) | q_odd(16) | k_odd(16) | 0(32)]
      (even/odd = RoPE pair elements, grouped across heads).

    Constant slab (f32, 120 x 128):
      rows  0:  8  bias / LayerNorm rows (bqkv, bo, g1, be1, b1, b2, g2, be2)
      rows  8: 16  rope cos multipliers (q cols scaled by 1/sqrt(hd), v cols = 1)
      rows 16: 24  rope sin multipliers (signs folded in, v/pad cols = 0)
      rows 24: 56  head mask for the tiled big-Q slab
      rows 56: 88  additive causal mask (0 / -1e30) in lanes 0:SEQ
      rows 88:120  head-output scatter mask (lanes 0:HID)
    """
    W = np.asarray(p["W_full"], np.float32)             # (HID, 3*HID)
    b = np.asarray(p["b_full"], np.float32)

    # PyTorch chunking: head n gets cols [n*3*hd : +hd] (q), +hd (k), +2*hd (v).
    even = np.arange(0, HD, 2)
    odd = np.arange(1, HD, 2)
    q_even = np.concatenate([n * 3 * HD + even for n in range(NH)])
    q_odd = np.concatenate([n * 3 * HD + odd for n in range(NH)])
    k_even = q_even + HD
    k_odd = q_odd + HD
    v_cols = np.concatenate([n * 3 * HD + 2 * HD + np.arange(HD) for n in range(NH)])
    col_perm = np.concatenate([q_even, k_even, v_cols, q_odd, k_odd])   # 96 cols

    wqkv = np.zeros((HID, 4 * HID), np.float32)
    wqkv[:, :3 * HID] = W[:, col_perm]
    bqkv = np.zeros((4 * HID,), np.float32)
    bqkv[:3 * HID] = b[col_perm]

    wo_pad = np.zeros((HID, 4 * HID), np.float32)
    wo_pad[:, :HID] = np.asarray(p["Wo"], np.float32)
    w_slab = np.concatenate(
        [wqkv, np.asarray(p["W1"], np.float32),
         np.asarray(p["W2"], np.float32).T, wo_pad], axis=1)            # (32, 512)

    # Fused rotary angles: seq index s = t*Lsp + l; spatial + temporal RoPE compose
    # into a single rotation by angle_spatial(l) + angle_temporal(t).
    inv_freq = 1.0 / (ROPE_BASE ** (np.arange(0, HD, 2, dtype=np.float32) / HD))
    Lsp = SEQ // NUM_T
    pos = np.arange(SEQ)
    ang = (pos % Lsp)[:, None] * inv_freq[None, :] + \
          (pos // Lsp)[:, None] * inv_freq[None, :]                     # (SEQ, hd2)
    cos16 = np.tile(np.cos(ang), (1, NH)).astype(np.float32)            # (SEQ, 16)
    sin16 = np.tile(np.sin(ang), (1, NH)).astype(np.float32)
    qscale = 1.0 / math.sqrt(HD)                                        # folded here (f32)
    half = HID // 2
    cs = np.zeros((SEQ, 4 * HID), np.float32)
    sn = np.zeros((SEQ, 4 * HID), np.float32)
    cs[:, 0:half] = cos16 * qscale          # q even
    cs[:, half:HID] = cos16                 # k even
    cs[:, HID:2 * HID] = 1.0                # v passthrough
    cs[:, 2 * HID:2 * HID + half] = cos16 * qscale   # q odd
    cs[:, 2 * HID + half:3 * HID] = cos16            # k odd
    sn[:, 0:half] = -sin16 * qscale
    sn[:, half:HID] = -sin16
    sn[:, 2 * HID:2 * HID + half] = sin16 * qscale
    sn[:, 2 * HID + half:3 * HID] = sin16

    # Precomputed constant masks (replace in-kernel iota / bit-op / where chains).
    qmask = np.zeros((NH * SEQ, 4 * HID), np.float32)
    omask = np.zeros((NH * SEQ, 4 * HID), np.float32)
    for h in range(NH):
        r0, r1 = h * SEQ, (h + 1) * SEQ
        qmask[r0:r1, h * HD2:(h + 1) * HD2] = 1.0                 # this head's even cols
        qmask[r0:r1, half + h * HD2:half + (h + 1) * HD2] = 1.0   # this head's odd cols
        omask[r0:r1, h * HD:(h + 1) * HD] = 1.0                   # this head's out cols
    causal = np.where(np.arange(SEQ)[None, :] <= np.arange(SEQ)[:, None],
                      0.0, NEG).astype(np.float32)
    amask = np.zeros((NH * SEQ, 4 * HID), np.float32)
    amask[:, :SEQ] = np.tile(causal, (NH, 1))

    vecs = np.zeros((8, 4 * HID), np.float32)
    vecs[0, :] = bqkv
    vecs[1, :HID] = np.asarray(p["bo"])
    vecs[2, :HID] = np.asarray(p["g1"])
    vecs[3, :HID] = np.asarray(p["be1"])
    vecs[4, :] = np.asarray(p["b1"])
    vecs[5, :HID] = np.asarray(p["b2"])
    vecs[6, :HID] = np.asarray(p["g2"])
    vecs[7, :HID] = np.asarray(p["be2"])

    c_slab = np.concatenate([vecs, cs, sn, qmask, amask, omask], axis=0)  # (120, 128)

    return dict(
        w=jnp.asarray(w_slab, jnp.bfloat16),
        c=jnp.asarray(c_slab, jnp.float32),
    )


# ----------------------------- main ------------------------------------------
if __name__ == "__main__":
    x, params = build_params()
    kparams = build_kernel_params(params)

    out = jax.block_until_ready(encoder_layer_pallas(x, kparams))
    ref = jax.block_until_ready(reference(x, params))

    max_err = float(jnp.max(jnp.abs(out - ref)))
    assert out.shape == (BATCH, SEQ, HID)
    assert max_err < 5e-2, f"kernel/reference mismatch: max abs err = {max_err}"

    print("KERNEL_OK")
</pallas_src>

<mosaic_0001>
module attributes {stable_mosaic.version = 11 : i64} {
  func.func @kernel(%arg0: i32, %arg1: memref<8x32xf32, #tpu.memory_space<vmem>>, %arg2: memref<32x512xbf16, #tpu.memory_space<vmem>>, %arg3: memref<120x128xf32, #tpu.memory_space<vmem>>, %arg4: memref<8x32xf32, #tpu.memory_space<vmem>>) attributes {dimension_semantics = [#tpu.dimension_semantics<parallel>], iteration_bounds = array<i64: 2>, scalar_prefetch = 0 : i64, scratch_operands = 0 : i64, tpu.core_type = #tpu.core_type<tc>, window_params = [{transform_indices = @transform_0, window_bounds = array<i64: 8, 32>}, {pipeline_mode = #tpu.pipeline_mode<synchronous>, transform_indices = @transform_1, window_bounds = array<i64: 32, 512>}, {pipeline_mode = #tpu.pipeline_mode<synchronous>, transform_indices = @transform_2, window_bounds = array<i64: 120, 128>}, {transform_indices = @transform_3, window_bounds = array<i64: 8, 32>}]} {
    %c0 = arith.constant 0 : index
    %c0_0 = arith.constant 0 : index
    %0 = vector.load %arg1[%c0, %c0_0] : memref<8x32xf32, #tpu.memory_space<vmem>>, vector<8x32xf32>
    %1 = arith.truncf %0 : vector<8x32xf32> to vector<8x32xbf16>
    %c0_1 = arith.constant 0 : index
    %c0_2 = arith.constant 0 : index
    %2 = vector.load %arg2[%c0_1, %c0_2] : memref<32x512xbf16, #tpu.memory_space<vmem>>, vector<32x128xbf16>
    %cst = arith.constant dense<0.000000e+00> : vector<8x128xf32>
    %3 = tpu.matmul %1, %2, %cst {dimension_numbers = #tpu.dot_dimension_numbers<[1], [0], [0], [1], [0, 0, 1, 1], [], []>} : vector<8x32xbf16>, vector<32x128xbf16>, vector<8x128xf32> -> vector<8x128xf32>
    %c0_3 = arith.constant 0 : index
    %c0_4 = arith.constant 0 : index
    %4 = vector.load %arg3[%c0_3, %c0_4] : memref<120x128xf32, #tpu.memory_space<vmem>>, vector<1x128xf32>
    %5 = vector.broadcast %4 : vector<1x128xf32> to vector<8x128xf32>
    %6 = arith.addf %3, %5 : vector<8x128xf32>
    %c8 = arith.constant 8 : index
    %c0_5 = arith.constant 0 : index
    %7 = vector.load %arg3[%c8, %c0_5] : memref<120x128xf32, #tpu.memory_space<vmem>>, vector<8x128xf32>
    %8 = arith.mulf %6, %7 : vector<8x128xf32>
    %c64_i32 = arith.constant 64 : i32
    %9 = tpu.dynamic_rotate %6 by %c64_i32 dim 1 : vector<8x128xf32>, i32 -> vector<8x128xf32>
    %c16 = arith.constant 16 : index
    %c0_6 = arith.constant 0 : index
    %10 = vector.load %arg3[%c16, %c0_6] : memref<120x128xf32, #tpu.memory_space<vmem>>, vector<8x128xf32>
    %11 = arith.mulf %9, %10 : vector<8x128xf32>
    %12 = arith.addf %8, %11 : vector<8x128xf32>
    %13 = vector.extract_strided_slice %12 {offsets = [0, 0], sizes = [8, 16], strides = [1, 1]} : vector<8x128xf32> to vector<8x16xf32>
    %14 = vector.extract_strided_slice %12 {offsets = [0, 64], sizes = [8, 16], strides = [1, 1]} : vector<8x128xf32> to vector<8x16xf32>
    %15 = tpu.concatenate %13, %14 in 1 : vector<8x16xf32>, vector<8x16xf32> -> vector<8x32xf32>
    %16 = vector.extract_strided_slice %12 {offsets = [0, 16], sizes = [8, 16], strides = [1, 1]} : vector<8x128xf32> to vector<8x16xf32>
    %17 = vector.extract_strided_slice %12 {offsets = [0, 80], sizes = [8, 16], strides = [1, 1]} : vector<8x128xf32> to vector<8x16xf32>
    %18 = tpu.concatenate %16, %17 in 1 : vector<8x16xf32>, vector<8x16xf32> -> vector<8x32xf32>
    %19 = vector.extract_strided_slice %12 {offsets = [0, 32], sizes = [8, 32], strides = [1, 1]} : vector<8x128xf32> to vector<8x32xf32>
    %20 = tpu.concatenate %15, %15, %15, %15 in 0 : vector<8x32xf32>, vector<8x32xf32>, vector<8x32xf32>, vector<8x32xf32> -> vector<32x32xf32>
    %c24 = arith.constant 24 : index
    %c0_7 = arith.constant 0 : index
    %21 = vector.load %arg3[%c24, %c0_7] : memref<120x128xf32, #tpu.memory_space<vmem>>, vector<32x32xf32>
    %22 = arith.mulf %20, %21 : vector<32x32xf32>
    %23 = arith.truncf %22 : vector<32x32xf32> to vector<32x32xbf16>
    %24 = arith.truncf %18 : vector<8x32xf32> to vector<8x32xbf16>
    %cst_8 = arith.constant dense<0.000000e+00> : vector<32x8xf32>
    %25 = tpu.matmul %23, %24, %cst_8 {dimension_numbers = #tpu.dot_dimension_numbers<[1], [1], [0], [0], [0, 0, 1, 0], [], []>} : vector<32x32xbf16>, vector<8x32xbf16>, vector<32x8xf32> -> vector<32x8xf32>
    %c56 = arith.constant 56 : index
    %c0_9 = arith.constant 0 : index
    %26 = vector.load %arg3[%c56, %c0_9] : memref<120x128xf32, #tpu.memory_space<vmem>>, vector<32x8xf32>
    %27 = arith.addf %25, %26 : vector<32x8xf32>
    %cst_10 = arith.constant dense<0xFF800000> : vector<32xf32>
    %28 = vector.multi_reduction <maximumf>, %27, %cst_10 [1] : vector<32x8xf32> to vector<32xf32>
    %29 = vector.shape_cast %28 : vector<32xf32> to vector<32x1xf32>
    %30 = vector.broadcast %29 : vector<32x1xf32> to vector<32x8xf32>
    %31 = arith.subf %27, %30 : vector<32x8xf32>
    %32 = math.exp %31 : vector<32x8xf32>
    %cst_11 = arith.constant dense<0.000000e+00> : vector<32xf32>
    %33 = vector.multi_reduction <add>, %32, %cst_11 [1] : vector<32x8xf32> to vector<32xf32>
    %34 = vector.shape_cast %33 : vector<32xf32> to vector<32x1xf32>
    %35 = tpu.reciprocal %34 {approx = true} : vector<32x1xf32> -> vector<32x1xf32>
    %36 = vector.broadcast %35 : vector<32x1xf32> to vector<32x8xf32>
    %37 = arith.mulf %32, %36 : vector<32x8xf32>
    %38 = arith.truncf %37 : vector<32x8xf32> to vector<32x8xbf16>
    %39 = arith.truncf %19 : vector<8x32xf32> to vector<8x32xbf16>
    %cst_12 = arith.constant dense<0.000000e+00> : vector<32x32xf32>
    %40 = tpu.matmul %38, %39, %cst_12 {dimension_numbers = #tpu.dot_dimension_numbers<[1], [0], [0], [1], [0, 0, 1, 1], [], []>} : vector<32x8xbf16>, vector<8x32xbf16>, vector<32x32xf32> -> vector<32x32xf32>
    %c88 = arith.constant 88 : index
    %c0_13 = arith.constant 0 : index
    %41 = vector.load %arg3[%c88, %c0_13] : memref<120x128xf32, #tpu.memory_space<vmem>>, vector<32x32xf32>
    %42 = arith.mulf %40, %41 : vector<32x32xf32>
    %43 = vector.extract_strided_slice %42 {offsets = [0, 0], sizes = [8, 32], strides = [1, 1]} : vector<32x32xf32> to vector<8x32xf32>
    %44 = vector.extract_strided_slice %42 {offsets = [8, 0], sizes = [8, 32], strides = [1, 1]} : vector<32x32xf32> to vector<8x32xf32>
    %45 = arith.addf %43, %44 : vector<8x32xf32>
    %46 = vector.extract_strided_slice %42 {offsets = [16, 0], sizes = [8, 32], strides = [1, 1]} : vector<32x32xf32> to vector<8x32xf32>
    %47 = arith.addf %45, %46 : vector<8x32xf32>
    %48 = vector.extract_strided_slice %42 {offsets = [24, 0], sizes = [8, 32], strides = [1, 1]} : vector<32x32xf32> to vector<8x32xf32>
    %49 = arith.addf %47, %48 : vector<8x32xf32>
    %50 = arith.negf %49 : vector<8x32xf32>
    %51 = math.exp %50 : vector<8x32xf32>
    %cst_14 = arith.constant 1.000000e+00 : f32
    %52 = vector.broadcast %cst_14 : f32 to vector<8x32xf32>
    %53 = arith.addf %52, %51 : vector<8x32xf32>
    %54 = arith.divf %52, %53 : vector<8x32xf32>
    %55 = arith.mulf %49, %54 : vector<8x32xf32>
    %56 = arith.truncf %55 : vector<8x32xf32> to vector<8x32xbf16>
    %c0_15 = arith.constant 0 : index
    %c384 = arith.constant 384 : index
    %57 = vector.load %arg2[%c0_15, %c384] : memref<32x512xbf16, #tpu.memory_space<vmem>>, vector<32x32xbf16>
    %cst_16 = arith.constant dense<0.000000e+00> : vector<8x32xf32>
    %58 = tpu.matmul %56, %57, %cst_16 {dimension_numbers = #tpu.dot_dimension_numbers<[1], [0], [0], [1], [0, 0, 1, 1], [], []>} : vector<8x32xbf16>, vector<32x32xbf16>, vector<8x32xf32> -> vector<8x32xf32>
    %c1 = arith.constant 1 : index
    %c0_17 = arith.constant 0 : index
    %59 = vector.load %arg3[%c1, %c0_17] : memref<120x128xf32, #tpu.memory_space<vmem>>, vector<1x32xf32>
    %60 = vector.broadcast %59 : vector<1x32xf32> to vector<8x32xf32>
    %61 = arith.addf %58, %60 : vector<8x32xf32>
    %62 = arith.addf %61, %0 : vector<8x32xf32>
    %c2 = arith.constant 2 : index
    %c0_18 = arith.constant 0 : index
    %63 = vector.load %arg3[%c2, %c0_18] : memref<120x128xf32, #tpu.memory_space<vmem>>, vector<1x32xf32>
    %c3 = arith.constant 3 : index
    %c0_19 = arith.constant 0 : index
    %64 = vector.load %arg3[%c3, %c0_19] : memref<120x128xf32, #tpu.memory_space<vmem>>, vector<1x32xf32>
    %cst_20 = arith.constant dense<0.000000e+00> : vector<8xf32>
    %65 = vector.multi_reduction <add>, %62, %cst_20 [1] : vector<8x32xf32> to vector<8xf32>
    %66 = vector.shape_cast %65 : vector<8xf32> to vector<8x1xf32>
    %cst_21 = arith.constant 3.200000e+01 : f32
    %67 = vector.broadcast %cst_21 : f32 to vector<8x1xf32>
    %68 = arith.divf %66, %67 : vector<8x1xf32>
    %69 = vector.broadcast %68 : vector<8x1xf32> to vector<8x32xf32>
    %70 = arith.subf %62, %69 : vector<8x32xf32>
    %71 = arith.mulf %70, %70 : vector<8x32xf32>
    %cst_22 = arith.constant dense<0.000000e+00> : vector<8xf32>
    %72 = vector.multi_reduction <add>, %71, %cst_22 [1] : vector<8x32xf32> to vector<8xf32>
    %73 = vector.shape_cast %72 : vector<8xf32> to vector<8x1xf32>
    %cst_23 = arith.constant 3.200000e+01 : f32
    %74 = vector.broadcast %cst_23 : f32 to vector<8x1xf32>
    %75 = arith.divf %73, %74 : vector<8x1xf32>
    %76 = vector.broadcast %68 : vector<8x1xf32> to vector<8x32xf32>
    %77 = arith.subf %62, %76 : vector<8x32xf32>
    %cst_24 = arith.constant 9.99999974E-6 : f32
    %78 = vector.broadcast %cst_24 : f32 to vector<8x1xf32>
    %79 = arith.addf %75, %78 : vector<8x1xf32>
    %80 = math.rsqrt %79 : vector<8x1xf32>
    %81 = vector.broadcast %80 : vector<8x1xf32> to vector<8x32xf32>
    %82 = arith.mulf %77, %81 : vector<8x32xf32>
    %83 = vector.broadcast %63 : vector<1x32xf32> to vector<8x32xf32>
    %84 = arith.mulf %82, %83 : vector<8x32xf32>
    %85 = vector.broadcast %64 : vector<1x32xf32> to vector<8x32xf32>
    %86 = arith.addf %84, %85 : vector<8x32xf32>
    %87 = arith.truncf %86 : vector<8x32xf32> to vector<8x32xbf16>
    %c0_25 = arith.constant 0 : index
    %c128 = arith.constant 128 : index
    %88 = vector.load %arg2[%c0_25, %c128] : memref<32x512xbf16, #tpu.memory_space<vmem>>, vector<32x128xbf16>
    %cst_26 = arith.constant dense<0.000000e+00> : vector<8x128xf32>
    %89 = tpu.matmul %87, %88, %cst_26 {dimension_numbers = #tpu.dot_dimension_numbers<[1], [0], [0], [1], [0, 0, 1, 1], [], []>} : vector<8x32xbf16>, vector<32x128xbf16>, vector<8x128xf32> -> vector<8x128xf32>
    %c4 = arith.constant 4 : index
    %c0_27 = arith.constant 0 : index
    %90 = vector.load %arg3[%c4, %c0_27] : memref<120x128xf32, #tpu.memory_space<vmem>>, vector<1x128xf32>
    %91 = vector.broadcast %90 : vector<1x128xf32> to vector<8x128xf32>
    %92 = arith.addf %89, %91 : vector<8x128xf32>
    %93 = arith.negf %92 : vector<8x128xf32>
    %94 = math.exp %93 : vector<8x128xf32>
    %cst_28 = arith.constant 1.000000e+00 : f32
    %95 = vector.broadcast %cst_28 : f32 to vector<8x128xf32>
    %96 = arith.addf %95, %94 : vector<8x128xf32>
    %97 = arith.divf %95, %96 : vector<8x128xf32>
    %98 = arith.mulf %92, %97 : vector<8x128xf32>
    %99 = arith.truncf %98 : vector<8x128xf32> to vector<8x128xbf16>
    %c0_29 = arith.constant 0 : index
    %c256 = arith.constant 256 : index
    %100 = vector.load %arg2[%c0_29, %c256] : memref<32x512xbf16, #tpu.memory_space<vmem>>, vector<32x128xbf16>
    %cst_30 = arith.constant dense<0.000000e+00> : vector<8x32xf32>
    %101 = tpu.matmul %99, %100, %cst_30 {dimension_numbers = #tpu.dot_dimension_numbers<[1], [1], [0], [0], [0, 0, 1, 0], [], []>} : vector<8x128xbf16>, vector<32x128xbf16>, vector<8x32xf32> -> vector<8x32xf32>
    %c5 = arith.constant 5 : index
    %c0_31 = arith.constant 0 : index
    %102 = vector.load %arg3[%c5, %c0_31] : memref<120x128xf32, #tpu.memory_space<vmem>>, vector<1x32xf32>
    %103 = vector.broadcast %102 : vector<1x32xf32> to vector<8x32xf32>
    %104 = arith.addf %101, %103 : vector<8x32xf32>
    %105 = arith.addf %104, %86 : vector<8x32xf32>
    %c6 = arith.constant 6 : index
    %c0_32 = arith.constant 0 : index
    %106 = vector.load %arg3[%c6, %c0_32] : memref<120x128xf32, #tpu.memory_space<vmem>>, vector<1x32xf32>
    %c7 = arith.constant 7 : index
    %c0_33 = arith.constant 0 : index
    %107 = vector.load %arg3[%c7, %c0_33] : memref<120x128xf32, #tpu.memory_space<vmem>>, vector<1x32xf32>
    %cst_34 = arith.constant dense<0.000000e+00> : vector<8xf32>
    %108 = vector.multi_reduction <add>, %105, %cst_34 [1] : vector<8x32xf32> to vector<8xf32>
    %109 = vector.shape_cast %108 : vector<8xf32> to vector<8x1xf32>
    %cst_35 = arith.constant 3.200000e+01 : f32
    %110 = vector.broadcast %cst_35 : f32 to vector<8x1xf32>
    %111 = arith.divf %109, %110 : vector<8x1xf32>
    %112 = vector.broadcast %111 : vector<8x1xf32> to vector<8x32xf32>
    %113 = arith.subf %105, %112 : vector<8x32xf32>
    %114 = arith.mulf %113, %113 : vector<8x32xf32>
    %cst_36 = arith.constant dense<0.000000e+00> : vector<8xf32>
    %115 = vector.multi_reduction <add>, %114, %cst_36 [1] : vector<8x32xf32> to vector<8xf32>
    %116 = vector.shape_cast %115 : vector<8xf32> to vector<8x1xf32>
    %cst_37 = arith.constant 3.200000e+01 : f32
    %117 = vector.broadcast %cst_37 : f32 to vector<8x1xf32>
    %118 = arith.divf %116, %117 : vector<8x1xf32>
    %119 = vector.broadcast %111 : vector<8x1xf32> to vector<8x32xf32>
    %120 = arith.subf %105, %119 : vector<8x32xf32>
    %cst_38 = arith.constant 9.99999974E-6 : f32
    %121 = vector.broadcast %cst_38 : f32 to vector<8x1xf32>
    %122 = arith.addf %118, %121 : vector<8x1xf32>
    %123 = math.rsqrt %122 : vector<8x1xf32>
    %124 = vector.broadcast %123 : vector<8x1xf32> to vector<8x32xf32>
    %125 = arith.mulf %120, %124 : vector<8x32xf32>
    %126 = vector.broadcast %106 : vector<1x32xf32> to vector<8x32xf32>
    %127 = arith.mulf %125, %126 : vector<8x32xf32>
    %128 = vector.broadcast %107 : vector<1x32xf32> to vector<8x32xf32>
    %129 = arith.addf %127, %128 : vector<8x32xf32>
    %c0_39 = arith.constant 0 : index
    %c0_40 = arith.constant 0 : index
    %130 = vector.load %arg4[%c0_39, %c0_40] : memref<8x32xf32, #tpu.memory_space<vmem>>, vector<8x32xf32>
    tpu.vector_store %arg4[%c0_39, %c0_40], %129 {strides = array<i32>} : memref<8x32xf32, #tpu.memory_space<vmem>>, vector<8x32xf32>,
    return
  }
  func.func @transform_0(%arg0: i32) -> (i32, i32) {
    %c0_i32 = arith.constant 0 : i32
    %c0_i32_0 = arith.constant 0 : i32
    return %arg0, %c0_i32 : i32, i32
  }
  func.func @transform_1(%arg0: i32) -> (i32, i32) {
    %c0_i32 = arith.constant 0 : i32
    %c0_i32_0 = arith.constant 0 : i32
    %c0_i32_1 = arith.constant 0 : i32
    return %c0_i32, %c0_i32_0 : i32, i32
  }
  func.func @transform_2(%arg0: i32) -> (i32, i32) {
    %c0_i32 = arith.constant 0 : i32
    %c0_i32_0 = arith.constant 0 : i32
    %c0_i32_1 = arith.constant 0 : i32
    return %c0_i32, %c0_i32_0 : i32, i32
  }
  func.func @transform_3(%arg0: i32) -> (i32, i32) {
    %c0_i32 = arith.constant 0 : i32
    %c0_i32_0 = arith.constant 0 : i32
    return %arg0, %c0_i32 : i32, i32
  }
}

</mosaic_0001>

<bundles_post_ra>
// kernel: tpu_custom_call.1
= control target key start
LH: loop header
LB: loop body
LE: loop exit
PB: predicated region body
PF: predicated region fallthrough
CT: control target
= control target key end

     0   :  { %8 = vsyncpa [#allocation3], 0  ;;  %s1554_s0 = inlined_call_operand.hbm [shape: f32[16,32], index: 0, kind: input, shape index: {}]   ;;  %s1555_s1 = inlined_call_operand.hbm [shape: bf16[32,512], index: 1, kind: input, shape index: {}]   ;;  %s1556_s2 = inlined_call_operand.hbm [shape: f32[120,128], index: 2, kind: input, shape index: {}]   ;;  %s1557_s3 = inlined_call_operand.hbm [shape: f32[16,32], index: 3, kind: output, shape index: {}]  }
   0x1   :  { %10 = vsyncpa [#allocation3 + $0x1], 0 }
   0x2   :  { %11 = vsyncpa [#allocation6], 0 }
   0x3   :  { %12 = vsyncpa [#allocation4], 0 }
   0x4   :  { %14 = vsyncpa [#allocation4 + $0x1], 0  ;;  %s1270_s12 = smov 0   ;;  %s1272_s13 = smov 0  }
   0x5   :  { %s1274_s14 = smov 0   ;;  %s1276_s15 = smov 0  }
   0x6 LB: > { %s1291_s16 = sadd.s32 4294967295, %s1234_s15   ;;  %s860_s17 = sadd.s32 4294967294, %s1234_s15   ;;  %s1234_s15 = sphi %s1276_s15, %s1577_s15   ;;  %s1230_s14 = sphi %s1274_s14, %s1576_s14   ;;  %s1226_s13 = sphi %s1272_s13, %s1575_s13   ;;  %s1222_s12 = sphi %s1270_s12, %s1574_s12  }
   0x7   : > { %p40_p0 = scmp.ne.s32.totalorder %s1226_s13, %s1222_s12  ;;  %p1558_p1 = scmp.eq.s32.totalorder %s1291_s16, 0 }
   0x8   : > { %p112_p3 = scmp.eq.s32.totalorder %s860_s17, 1  ;;  %p861_p5 = scmp.ge.s32.totalorder %s1234_s15, 1 }
   0x9   : > { %p1300_p4 = por %p1558_p1, %p40_p0  ;;  %p119_p7 = scmp.lt.s32.totalorder %s1234_s15, 3 }
   0xa   : > { %p1305_p6 = por %p112_p3, %p40_p0  ;;  %s1236_s21 = smov [#allocation5]  }
   0xb   : > { %s1561_s18 = scalar_select %p1300_p4, 1, 0 }
   0xc   : > { %s1562_s19 = scalar_select %p1305_p6, 1, 0 }
   0xd   : > { %p1310_p8 = pnand %p861_p5, %p119_p7  ;;  %s131_s22 = sshll.u32 %s1236_s21, 4  ;;  %s1314_s22 = int_to_ptr.vmem [resolvable:$true] %s131_s22 }
   0xe   : > { %s1237_s24 = smov [#allocation7]   ;;  %s1078_s28 = scalar_lea.hbm %s1555_s1, 1024 }
   0xf   : > { %p977_p9 = pneg %p1310_p8  ;;  %s144_s25 = sshll.u32 %s1237_s24, 4  ;;  %s1325_s25 = int_to_ptr.vmem [resolvable:$true] %s144_s25 }
  0x10   : > { %p1079_p12 = scmp.ne.s32.totalorder %s1555_s1, %s1078_s28  ;;  %p1085_p5 = scmp.lt.u32.totalorder %s1078_s28, %s1555_s1 }
  0x11   : > { %p1321_p11 = pnand %p977_p9, %p1558_p1 }
  0x13   : > { %p1080_p13 = pneg %p1321_p11 }
  0x15   : > { %p1081_p0 = pnand %p1080_p13, %p1079_p12 }
  0x17   : > { %p1082_p3 = pneg %p1081_p0 }
  0x19   : > { %p1087_p7 = pnand %p1085_p5, %p1082_p3 }
  0x1b   : > { %1090 = shalt.err (!%p1087_p7)
}
  0x1c   : > { %s1091_s6 = scalar_lea.vmem %s1314_s22, 1024  ;;  %p1099_p2 = scmp.lt.s32.totalorder %s1314_s22, %s1314_s22 }
  0x1d   : > { %p1092_p9 = scmp.ne.s32.totalorder %s1314_s22, %s1091_s6  ;;  %p1100_p12 = scmp.lt.s32.totalorder %s1091_s6, %s1091_s6 }
  0x1f   : > { %p1094_p10 = pnand %p1092_p9, %p1080_p13  ;;  %p1101_p0 = por %p1100_p12, %p1099_p2 }
  0x21   : > { %p1095_p1 = pneg %p1094_p10 }
  0x23   : > { %p1102_p6 = pnand %p1101_p0, %p1095_p1 }
  0x25   : > { %1105 = shalt.err (!%p1102_p6)
}
  0x26   : > { %s1238_s7 = smov 256   ;;  %s1239_s8 = smov 16  }
  0x27   : > { %980 = dma.hbm_to_vmem [thread:$0]  (!%p1321_p11), %s1555_s1, 1024, %s1314_s22, [#allocation6], %s1238_s7, %s1238_s7, %s1239_s8  }
  0x28   : > { %s1106_s21 = scalar_lea.hbm %s1556_s2, 1920 }
  0x29   : > { %p1107_p2 = scmp.ne.s32.totalorder %s1556_s2, %s1106_s21  ;;  %p1113_p10 = scmp.lt.u32.totalorder %s1106_s21, %s1556_s2 }
  0x2b   : > { %p1109_p1 = pnand %p1107_p2, %p1080_p13 }
  0x2d   : > { %p1110_p6 = pneg %p1109_p1 }
  0x2f   : > { %p1115_p3 = pnand %p1113_p10, %p1110_p6 }
  0x31   : > { %1118 = shalt.err (!%p1115_p3)
}
  0x32   : > { %s1119_s22 = scalar_lea.vmem %s1325_s25, 1920  ;;  %p1127_p12 = scmp.lt.s32.totalorder %s1325_s25, %s1325_s25 }
  0x33   : > { %p1120_p5 = scmp.ne.s32.totalorder %s1325_s25, %s1119_s22  ;;  %p1128_p0 = scmp.lt.s32.totalorder %s1119_s22, %s1119_s22 }
  0x35   : > { %p1122_p7 = pnand %p1120_p5, %p1080_p13  ;;  %p1129_p2 = por %p1128_p0, %p1127_p12 }
  0x37   : > { %p1123_p9 = pneg %p1122_p7 }
  0x39   : > { %p1130_p1 = pnand %p1129_p2, %p1123_p9 }
  0x3b   : > { %1133 = shalt.err (!%p1130_p1)
}
  0x3c   : > { %s1240_s29 = smov 128   ;;  %s1241_s30 = smov 8  }
  0x3d   : > { %983 = dma.hbm_to_vmem [thread:$0]  (!%p1321_p11), %s1556_s2, 1920, %s1325_s25, [#allocation6], %s1240_s29, %s1240_s29, %s1241_s30  }
  0x3e   : > { %s1380_s6 = sadd.s32 1, %s1234_s15   ;;  %s27_s8 = sadd.s32 1, %s1230_s14 }
  0x3f   : > { %s24_s7 = ssub.s32 %s1234_s15, %s1380_s6  ;;  %p34_p6 = scmp.ne.s32.totalorder %s1230_s14, %s1226_s13 }
  0x40   : > { %p25_p13 = scmp.eq.s32.totalorder %s24_s7, 0  ;;  %p35_p10 = scmp.eq.s32.totalorder %s1234_s15, 0 }
  0x41   : > { %p1565_p5 = scmp.eq.s32.totalorder %s1291_s16, 1  ;;  %p994_p9 = scmp.lt.s32.totalorder %s1234_s15, 2 }
  0x42   : > { %s1389_s9 = scalar_select %p25_p13, %s1230_s14, %s27_s8  }
  0x43   : > { %p36_p3 = por %p35_p10, %p34_p6  ;;  %p1393_p7 = por %p1565_p5, %p34_p6 }
  0x44   : > { %s158_s23 = sand.u32 1, %s1230_s14   ;;  %s866_s25 = sshll.u32 %s1234_s15, 7 }
  0x45   : > { %s1566_s10 = scalar_select %p1393_p7, 1, 0 }
  0x46   : > { %s865_s11 = sshll.u32 %s158_s23, 3  ;;  %s1403_s24 = scalar_lea.hbm %s1554_s0, %s866_s25 }
  0x47   : > { %s162_s26 = scalar_lea.vmem [#allocation2], %s865_s11  ;;  %p1407_p11 = pnand %p994_p9, %p36_p3 }
  0x48   : > { %s169_s27 = sshll.u32 %s162_s26, 4  ;;  %s159_s22 = scalar_lea.sflag [#allocation3], %s158_s23  ;;  %s1405_s27 = int_to_ptr.vmem [resolvable:$true] %s169_s27 }
  0x49   : > { %s1134_s29 = scalar_lea.hbm %s1403_s24, 128  ;;  %p1136_p0 = pneg %p1407_p11 }
  0x4a   : > { %p1135_p12 = scmp.ne.s32.totalorder %s1403_s24, %s1134_s29  ;;  %s1139_s5 = scalar_lea.hbm %s1554_s0, 256 }
  0x4b   : > { %p1140_p13 = scmp.lt.u32.totalorder %s1403_s24, %s1554_s0  ;;  %p1141_p6 = scmp.lt.u32.totalorder %s1139_s5, %s1134_s29 }
  0x4c   : > { %p1137_p2 = pnand %p1136_p0, %p1135_p12  ;;  %p1143_p3 = scmp.lt.u32.totalorder %s1134_s29, %s1403_s24 }
  0x4d   : > { %p1142_p10 = por %p1141_p6, %p1140_p13 }
  0x4e   : > { %p1138_p1 = pneg %p1137_p2 }
  0x4f   : > { %p1144_p5 = por %p1143_p3, %p1142_p10 }
  0x51   : > { %p1145_p9 = pnand %p1144_p5, %p1138_p1 }
  0x53   : > { %1148 = shalt.err (!%p1145_p9)
}
  0x54   : > { %s1149_s23 = scalar_lea.vmem %s1405_s27, 128  ;;  %s1242_s11 = smov [#allocation2]  }
  0x55   : > { %p1150_p12 = scmp.ne.s32.totalorder %s1405_s27, %s1149_s23  ;;  %s1154_s25 = sshll.u32 %s1242_s11, 4  ;;  %s1155_s25 = int_to_ptr.vmem [resolvable:$false] %s1154_s25 }
  0x56   : > { %s1156_s17 = scalar_lea.vmem %s1155_s25, 256  ;;  %p1157_p4 = scmp.lt.s32.totalorder %s1405_s27, %s1155_s25 }
  0x57   : > { %p1152_p2 = pnand %p1150_p12, %p1136_p0  ;;  %p1158_p13 = scmp.lt.s32.totalorder %s1156_s17, %s1149_s23 }
  0x59   : > { %p1153_p7 = pneg %p1152_p2  ;;  %p1159_p6 = por %p1158_p13, %p1157_p4 }
  0x5b   : > { %p1160_p10 = pnand %p1159_p6, %p1153_p7 }
  0x5d   : > { %1163 = shalt.err (!%p1160_p10)
}
  0x5e   : > { %987 = dma.hbm_to_vmem [thread:$0]  (!%p1407_p11), %s1403_s24, 128, %s1405_s27, %s159_s22  }
  0x5f   : > { %178 = sbr.rel (%p1310_p8) target bundleno = 2685 (0xa7d), region = 32  ;;  %s1439_s21 = sand.u32 (!%p1310_p8), 1, %s1226_s13  }
  0x60   : > { %s868_s26 = sshll.u32 (!%p1310_p8), %s1439_s21, 3  ;;  %s181_s29 = scalar_lea.sflag (!%p1310_p8), [#allocation3], %s1439_s21 }
  0x61   : > { %s184_s30 = scalar_lea.vmem (!%p1310_p8), [#allocation2], %s868_s26  ;;  %p1568_p4 = scmp.ne.s32.totalorder (!%p1310_p8), %s1561_s18, 0 }
  0x66   : > { %1209 = dma.done.wait (%p1568_p4), %s181_s29, 128  }
  0x67   : > { %1211 = vsyncadd (%p1568_p4), %s181_s29, 4294967168  ;;  %p1569_p7 = scmp.eq.s32.totalorder %s1291_s16, 0 }
  0x69   : > { %1213 = dma.done.wait (%p1569_p7), [#allocation6], 2944   ;;  %p1570_p8 = pmov %p1569_p7 }
  0x6a   : > { %v1243_v0 = vmov 0.0   ;;  %vm1244_vm0 = vmmov 0   ;;  %v1042_v1 = vld [vmem:[#allocation5] ss:$16 sps:$4 sm:$0xff]   ;;  %vm239_vm1 = vcmask 261120   ;;  %s1245_s18 = smov 64  }
  0x6b   : > { %1215 = vsyncadd (%p1570_p8), [#allocation6], 4294964352  ;;  %919 = vmatprep.subr.bf16.mxu0 %v1243_v0  ;;  %923 = vmatprep.mubr.msk.bf16.mxu0 %vm1244_vm0, %v1243_v0  ;;  %v1043_v2 = vld [vmem:[#allocation5 + $0x20] ss:$16 sps:$4 sm:$0xff]   ;;  %v283_v11 = vld [vmem:[#allocation7 + $0x8] sm:$0xff]  ;;  %s1246_s20 = smov 112  }
  0x6c   : > { %920 = vmatpush3.bf16.msra.mxu0 %v1042_v1  ;;  %v1456_v3 = vld [vmem:[%s184_s30] sm:$0xff]  ;;  %v872_v5 = vld [vmem:[#allocation7] ss:$0 sm:$0xff]  ;;  %s1247_s24 = smov 80   ;;  %vm294_vm2 = vcmask 130048   ;;  %v305_v20 = vld [vmem:[#allocation7 + $0x28] sm:$0xff] }
  0x6d   : > { %921 = vmatprep.subr.bf16.mxu0 %v1243_v0  ;;  %v217_v4 = vpack.c.bf16 %v1456_v3, %v1456_v3  ;;  %v287_v12 = vld [vmem:[#allocation7 + $0x10] sm:$0xff]  ;;  %v303_v23 = vld [vmem:[#allocation7 + $0x18] sm:$0xff]  ;;  %v304_v24 = vld [vmem:[#allocation7 + $0x20] sm:$0xff]  ;;  %vm376_vm3 = vcmask 64512   ;;  %s1248_s27 = smov 96   ;;  %vm433_vm4 = vcmask 1043456  }
  0x6e   : > { %v306_v22 = vld [vmem:[#allocation7 + $0x30] sm:$0xff]  ;;  %v314_v34 = vld [vmem:[#allocation7 + $0x38] sm:$0xff]  ;;  %v316_v36 = vld [vmem:[#allocation7 + $0x48] sm:$0xff]  ;;  %s898_s28 = sshll.u32 %s1291_s16, 7  ;;  %s214_s22 = scalar_lea.vmem [#allocation8], %s868_s26 }
  0x6f   : > { %v315_v38 = vld [vmem:[#allocation7 + $0x40] sm:$0xff]  ;;  %v317_v45 = vld [vmem:[#allocation7 + $0x50] sm:$0xff]  ;;  %s771_s4 = sshll.u32 %s214_s22, 4  ;;  %s1509_s8 = scalar_lea.hbm %s1557_s3, %s898_s28  ;;  %s1511_s4 = int_to_ptr.vmem [resolvable:$true] %s771_s4 }
  0x70   : > { %922 = vmatpush3.bf16.msra.mxu0 %v1043_v2  ;;  %s758_s23 = scalar_lea.sflag [#allocation4], %s1439_s21  ;;  %s1164_s11 = scalar_lea.vmem %s1511_s4, 128 }
  0x71   : > { %p1165_p11 = scmp.ne.s32.totalorder %s1511_s4, %s1164_s11  ;;  %p1571_p0 = scmp.ne.s32.totalorder %s1566_s10, 0 }
  0x72   : > { %s1249_s16 = smov [#allocation8]  }
  0x73   : > { %924 = vmatmul.mubr.msk.bf16.vlgmr.msra.gmra.mrb[0].mxu0 %vm239_vm1, %v217_v4  ;;  %p1166_p1 = pnand %p1165_p11, %p1571_p0  ;;  %s1168_s25 = sshll.u32 %s1249_s16, 4  ;;  %s1169_s25 = int_to_ptr.vmem [resolvable:$false] %s1168_s25 }
  0x74   : > { %s1170_s17 = scalar_lea.vmem %s1169_s25, 256  ;;  %p1171_p5 = scmp.lt.s32.totalorder %s1511_s4, %s1169_s25 }
  0x75   : > { %p1167_p3 = pneg %p1166_p1  ;;  %p1172_p9 = scmp.lt.s32.totalorder %s1170_s17, %s1164_s11 }
  0x77   : > { %p1173_p12 = por %p1172_p9, %p1171_p5 }
  0x79   : > { %p1174_p2 = pnand %p1173_p12, %p1167_p3 }
 0x146   : > { %v277_v6 = vpop.f32.mrb[0].mxu0 }
 0x147   : > { %v278_v7 = vadd.f32 %v872_v5, %v277_v6  ;;  %v925_v8 = vpop.f32.mrb[1].mxu0 }
 0x148   : > { %v280_v9 = vpop.f32.mrb[2].mxu0 }
 0x149   : > { %285 = vrot.lane.b32.xlu0 %v278_v7, %s1245_s18  ;;  %v926_v10 = vpop.f32.mrb[3].mxu0  ;;  %v284_v14 = vmul.f32 %v283_v11, %v278_v7 }
 0x1bb   : > { %v286_v13 = vpop.permute.xlu0 %285 }
 0x1bc   : > { %v288_v15 = vmul.f32 %v287_v12, %v286_v13 }
 0x1be   : > { %v1462_v16 = vadd.f32 %v288_v15, %v284_v14 }
 0x1c0   : > { %299 = vrot.lane.b32.xlu1 %v1462_v16, %s1245_s18  ;;  %296 = vrot.lane.b32.xlu0 %v1462_v16, %s1246_s20  ;;  %v423_v8 = vpack.c.bf16 %v1462_v16, %v1462_v16 }
 0x1c4   : > { %291 = vrot.lane.b32.xlu1 %v1462_v16, %s1247_s24 }
 0x232   : > { %v300_v17 = vpop.permute.xlu1 %299  ;;  %v297_v18 = vpop.permute.xlu0 %296 }
 0x233   : > { %v302_v19 = vsel %vm294_vm2, %v297_v18, %v300_v17 }
 0x234   : > { %v313_v21 = vpack.c.bf16 %v302_v19, %v302_v19 }
 0x236   : > { %v292_v25 = vpop.permute.xlu1 %291  ;;  %963 = vmatprep.subr.msk.bf16.mxu1 %vm239_vm1, %v313_v21  ;;  %v325_v26 = vsel %vm239_vm1, %v313_v21, 0 }
 0x237   : > { %v295_v27 = vsel %vm294_vm2, %v1462_v16, %v292_v25  ;;  %928 = vmatpush3.bf16.xpose.msra.mxu1 %v325_v26  ;;  %v1044_v25 = vld [vmem:[#allocation5 + $0xc] ss:$16 sps:$4 sm:$0xff]  }
 0x238   : > { %v309_v28 = vmul.f32 %v305_v20, %v295_v27  ;;  %v310_v29 = vmul.f32 %v306_v22, %v295_v27  ;;  %v307_v30 = vmul.f32 %v303_v23, %v295_v27  ;;  %v308_v31 = vmul.f32 %v304_v24, %v295_v27  ;;  %939 = vmatprep.subr.bf16.mxu1 %v1243_v0  ;;  %v1045_v26 = vld [vmem:[#allocation5 + $0x2c] ss:$16 sps:$4 sm:$0xff]  }
 0x23a   : > { %v311_v32 = vpack.c.bf16 %v308_v31, %v307_v30  ;;  %v312_v33 = vpack.c.bf16 %v310_v29, %v309_v28  ;;  %v486_v29 = vld [vmem:[#allocation7 + $0x58] sm:$0xff]  ;;  %v487_v30 = vld [vmem:[#allocation7 + $0x60] sm:$0xff] }
 0x23c   : > { %929 = vmatprep.mubr.msk.bf16.mxu1 %vm239_vm1, %v311_v32  ;;  %v488_v32 = vld [vmem:[#allocation7 + $0x68] sm:$0xff] }
 0x23e   : > { %930 = vmatmul.mubr.msk.bf16.vlgmr.msra.gmra.mrb[0].mxu1 %vm239_vm1, %v312_v33 }
 0x23f   : > { %943 = vmatprep.mubr.msk.bf16.mxu1 %vm1244_vm0, %v1243_v0  ;;  %940 = vmatpush3.bf16.msra.mxu1 %v1044_v25 }
 0x240   : > { %941 = vmatprep.subr.bf16.mxu1 %v1243_v0 }
 0x243   : > { %942 = vmatpush3.bf16.msra.mxu1 %v1045_v26 }
 0x244   : > { %955 = vmatprep.subr.bf16.mxu1 %v1243_v0 }
 0x311   : > { %v931_v35 = vpop.f32.mrb[0].mxu1 }
 0x312   : > { %v361_v37 = vpop.f32.mrb[1].mxu1  ;;  %v370_v42 = vadd.f32 %v931_v35, %v316_v36  ;;  %v489_v36 = vld [vmem:[#allocation7 + $0x70] sm:$0xff] }
 0x313   : > { %v362_v39 = vadd.f32 %v361_v37, %v314_v34  ;;  %v932_v40 = vpop.f32.mrb[2].mxu1 }
 0x314   : > { %v364_v41 = vpop.f32.mrb[3].mxu1  ;;  %v373_v47 = vadd.f32 %v932_v40, %v317_v45  ;;  %v383_v48 = vsel %vm376_vm3, %v370_v42, -inf }
 0x315   : > { %v365_v43 = vadd.f32 %v364_v41, %v315_v38  ;;  %v377_v44 = vsel %vm376_vm3, %v362_v39, -inf }
 0x316   : > { %378 = vmax.xlane.f32.xlu0 %v377_v44  ;;  %v386_v49 = vsel %vm376_vm3, %v373_v47, -inf }
 0x317   : > { %v380_v46 = vsel %vm376_vm3, %v365_v43, -inf }
 0x318   : > { %381 = vmax.xlane.f32.xlu1 %v380_v46 }
 0x31a   : > { %384 = vmax.xlane.f32.xlu0 %v383_v48  ;;  %v881_v48 = vld [vmem:[#allocation7 + $0x1] ss:$0 sm:$0xff] }
 0x31e   : > { %387 = vmax.xlane.f32.xlu0 %v386_v49 }
 0x3a3   : > { %v379_v50 = vpop.xlane.xlu0 %378 }
 0x3a4   : > { %v389_v52 = vsub.f32 %v362_v39, %v379_v50 }
 0x3a5   : > { %v382_v51 = vpop.xlane.xlu1 %381 }
 0x3a6   : > { %v390_v53 = vsub.f32 %v365_v43, %v382_v51  ;;  %v393_v57 = vmul.f32 1.442695, %v389_v52 }
 0x3a7   : > { %v385_v54 = vpop.xlane.xlu0 %384 }
 0x3a8   : > { %v395_v55 = vmul.f32 1.442695, %v390_v53  ;;  %v391_v56 = vsub.f32 %v370_v42, %v385_v54 }
 0x3aa   : > { %1050 = vpow2.f32 %v395_v55  ;;  %v397_v58 = vmul.f32 1.442695, %v391_v56 }
 0x3ab   : > { %v388_v59 = vpop.xlane.xlu0 %387 }
 0x3ac   : > { %1052 = vpow2.f32 %v397_v58  ;;  %v392_v60 = vsub.f32 %v373_v47, %v388_v59 }
 0x3ad   : > { %1054 = vpow2.f32 %v393_v57 }
 0x3ae   : > { %v399_v61 = vmul.f32 1.442695, %v392_v60 }
 0x3b0   : > { %1056 = vpow2.f32 %v399_v61  ;;  %v1046_v61 = vld [vmem:[#allocation5 + $0x4] ss:$16 sps:$4 sm:$0xff]  }
 0x3b4   : > { %v1051_v62 = vpop.eup %1050 }
 0x3b5   : > { %v404_v63 = vsel %vm376_vm3, %v1051_v62, 0.0 }
 0x3b6   : > { %v1053_v1 = vpop.eup %1052  ;;  %405 = vadd.xlane.f32.xlu0 %v404_v63 }
 0x3b7   : > { %v407_v2 = vsel %vm376_vm3, %v1053_v1, 0.0  ;;  %v1055_v4 = vpop.eup %1054 }
 0x3b8   : > { %408 = vadd.xlane.f32.xlu1 %v407_v2  ;;  %v401_v6 = vsel %vm376_vm3, %v1055_v4, 0.0 }
 0x3ba   : > { %v1057_v5 = vpop.eup %1056 }
 0x3bb   : > { %v410_v7 = vsel %vm376_vm3, %v1057_v5, 0.0 }
 0x3bc   : > { %402 = vadd.xlane.f32.xlu1 %v401_v6  ;;  %411 = vadd.xlane.f32.xlu0 %v410_v7  ;;  %v886_v6 = vld [vmem:[#allocation7 + $0x3] ss:$0 sm:$0xff] }
 0x3cd   : > { %425 = vrot.lane.b32.xlu1 %v423_v8, %s1248_s27 }
 0x443   : > { %v406_v9 = vpop.xlane.xlu0 %405 }
 0x444   : > { %1058 = vrcp.f32 %v406_v9 }
 0x445   : > { %v409_v10 = vpop.xlane.xlu1 %408 }
 0x446   : > { %1060 = vrcp.f32 %v409_v10  ;;  %v1048_v10 = vld [vmem:[#allocation5 + $0x8] ss:$16 sps:$4 sm:$0xff]  }
 0x449   : > { %v403_v11 = vpop.xlane.xlu1 %402  ;;  %v412_v12 = vpop.xlane.xlu0 %411 }
 0x44a   : > { %1062 = vrcp.f32 %v403_v11  ;;  %v1049_v11 = vld [vmem:[#allocation5 + $0x28] ss:$16 sps:$4 sm:$0xff]  }
 0x44b   : > { %1064 = vrcp.f32 %v412_v12  ;;  %v887_v12 = vld [vmem:[#allocation7 + $0x4] ss:$0 sm:$0xff] }
 0x44d   : > { %v426_v13 = vpop.permute.xlu1 %425 }
 0x44e   : > { %v435_v14 = vsel %vm433_vm4, %v426_v13, 0  ;;  %964 = vmatprep.subr.msk.bf16.mxu0 %vm433_vm4, %v426_v13  ;;  %v1059_v15 = vpop.eup %1058 }
 0x44f   : > { %934 = vmatpush3.bf16.msra.mxu0 %v435_v14  ;;  %v418_v20 = vmul.f32 %v1059_v15, %v1051_v62  ;;  %v1047_v62 = vld [vmem:[#allocation5 + $0x24] ss:$16 sps:$4 sm:$0xff]  }
 0x450   : > { %947 = vmatprep.subr.bf16.mxu0 %v1243_v0  ;;  %v1061_v17 = vpop.eup %1060 }
 0x451   : > { %v419_v21 = vmul.f32 %v1061_v17, %v1053_v1 }
 0x454   : > { %v1063_v16 = vpop.eup %1062 }
 0x455   : > { %v1065_v18 = vpop.eup %1064  ;;  %v417_v19 = vmul.f32 %v1063_v16, %v1055_v4  ;;  %v885_v4 = vld [vmem:[#allocation7 + $0x2] ss:$0 sm:$0xff] }
 0x456   : > { %v420_v22 = vmul.f32 %v1065_v18, %v1057_v5 }
 0x457   : > { %v421_v23 = vpack.c.bf16 %v418_v20, %v417_v19 }
 0x458   : > { %v422_v24 = vpack.c.bf16 %v420_v22, %v419_v21 }
 0x459   : > { %935 = vmatprep.mubr.msk.bf16.mxu0 %vm376_vm3, %v421_v23 }
 0x45a   : > { %936 = vmatmul.mubr.msk.bf16.vlgmr.msra.gmra.mrb[4].mxu0 %vm376_vm3, %v422_v24  ;;  %v892_v24 = vld [vmem:[#allocation7 + $0x5] ss:$0 sm:$0xff] }
 0x45b   : > { %951 = vmatprep.mubr.msk.bf16.mxu0 %vm1244_vm0, %v1243_v0  ;;  %948 = vmatpush3.bf16.msra.mxu0 %v1046_v61 }
 0x45c   : > { %949 = vmatprep.subr.bf16.mxu0 %v1243_v0 }
 0x45f   : > { %950 = vmatpush3.bf16.msra.mxu0 %v1047_v62 }
 0x52d   : > { %v937_v27 = vpop.f32.mrb[4].mxu0 }
 0x52e   : > { %v471_v28 = vpop.f32.mrb[5].mxu0  ;;  %v492_v37 = vmul.f32 %v937_v27, %v488_v32 }
 0x52f   : > { %v938_v31 = vpop.f32.mrb[6].mxu0  ;;  %v490_v34 = vmul.f32 %v486_v29, %v471_v28 }
 0x530   : > { %v474_v33 = vpop.f32.mrb[7].mxu0  ;;  %v493_v39 = vmul.f32 %v938_v31, %v489_v36 }
 0x531   : > { %v491_v35 = vmul.f32 %v487_v30, %v474_v33 }
 0x533   : > { %v494_v38 = vadd.f32 %v491_v35, %v490_v34 }
 0x535   : > { %v495_v40 = vadd.f32 %v494_v38, %v492_v37 }
 0x537   : > { %v496_v41 = vadd.f32 %v495_v40, %v493_v39  ;;  %v895_v40 = vld [vmem:[#allocation7 + $0x6] ss:$0 sm:$0xff] }
 0x539   : > { %v880_v42 = vmul.f32 -1.442695, %v496_v41 }
 0x53b   : > { %1066 = vpow2.f32 %v880_v42  ;;  %v896_v42 = vld [vmem:[#allocation7 + $0x7] ss:$0 sm:$0xff] }
 0x545   : > { %v1067_v43 = vpop.eup %1066 }
 0x546   : > { %v500_v44 = vadd.f32 1.0, %v1067_v43 }
 0x548   : > { %1068 = vrcp.f32 %v500_v44 }
 0x552   : > { %v1069_v45 = vpop.eup %1068 }
 0x553   : > { %v503_v46 = vmul.f32 %v1069_v45, %v496_v41 }
 0x555   : > { %v504_v47 = vpack.c.bf16 %v503_v46, %v503_v46 }
 0x557   : > { %944 = vmatmul.mubr.msk.bf16.vlgmr.msra.gmra.mrb[4].mxu1 %vm239_vm1, %v504_v47 }
 0x558   : > { %959 = vmatprep.mubr.msk.bf16.mxu1 %vm1244_vm0, %v1243_v0  ;;  %956 = vmatpush3.bf16.xpose.msra.mxu1 %v1048_v10 }
 0x559   : > { %957 = vmatprep.subr.bf16.mxu1 %v1243_v0 }
 0x560   : > { %958 = vmatpush3.bf16.xpose.msra.mxu1 %v1049_v11 }
 0x62a   : > { %v563_v49 = vpop.f32.mrb[4].mxu1 }
 0x62b   : > { %v564_v50 = vadd.f32 %v881_v48, %v563_v49  ;;  %v945_v51 = vpop.f32.mrb[5].mxu1 }
 0x62c   : > { %v566_v52 = vpop.f32.mrb[6].mxu1 }
 0x62d   : > { %v946_v53 = vpop.f32.mrb[7].mxu1  ;;  %v569_v54 = vadd.f32 %v564_v50, %v1456_v3 }
 0x62f   : > { %v572_v55 = vsel %vm239_vm1, %v569_v54, 0.0 }
 0x630   : > { %573 = vadd.xlane.f32.xlu0 %v572_v55 }
 0x6bd   : > { %v574_v56 = vpop.xlane.xlu0 %573 }
 0x6be   : > { %v576_v57 = vmul.f32 0.03125, %v574_v56 }
 0x6c0   : > { %v577_v58 = vsub.f32 %v569_v54, %v576_v57 }
 0x6c2   : > { %v578_v59 = vmul.f32 %v577_v58, %v577_v58 }
 0x6c4   : > { %v579_v60 = vsel %vm239_vm1, %v578_v59, 0.0 }
 0x6c5   : > { %580 = vadd.xlane.f32.xlu0 %v579_v60 }
 0x752   : > { %v581_v63 = vpop.xlane.xlu0 %580 }
 0x753   : > { %v582_v1 = vmul.f32 0.03125, %v581_v63 }
 0x755   : > { %v583_v2 = vadd.f32 1e-05, %v582_v1 }
 0x757   : > { %1070 = vrsqrt.f32 %v583_v2 }
 0x761   : > { %v1071_v3 = vpop.eup %1070 }
 0x762   : > { %v585_v5 = vmul.f32 %v1071_v3, %v577_v58 }
 0x764   : > { %v590_v7 = vmul.f32 %v885_v4, %v585_v5 }
 0x766   : > { %v595_v8 = vadd.f32 %v886_v6, %v590_v7 }
 0x768   : > { %v596_v9 = vpack.c.bf16 %v595_v8, %v595_v8 }
 0x76a   : > { %952 = vmatmul.mubr.msk.bf16.vlgmr.msra.gmra.mrb[8].mxu0 %vm239_vm1, %v596_v9 }
 0x83d   : > { %v655_v13 = vpop.f32.mrb[8].mxu0 }
 0x83e   : > { %v656_v14 = vadd.f32 %v887_v12, %v655_v13  ;;  %v953_v15 = vpop.f32.mrb[9].mxu0 }
 0x83f   : > { %v658_v17 = vpop.f32.mrb[10].mxu0 }
 0x840   : > { %v891_v16 = vmul.f32 -1.442695, %v656_v14  ;;  %v954_v18 = vpop.f32.mrb[11].mxu0 }
 0x842   : > { %1072 = vpow2.f32 %v891_v16 }
 0x84c   : > { %v1073_v19 = vpop.eup %1072 }
 0x84d   : > { %v664_v20 = vadd.f32 1.0, %v1073_v19 }
 0x84f   : > { %1074 = vrcp.f32 %v664_v20 }
 0x859   : > { %v1075_v21 = vpop.eup %1074 }
 0x85a   : > { %v667_v22 = vmul.f32 %v1075_v21, %v656_v14 }
 0x85c   : > { %v668_v23 = vpack.c.bf16 %v667_v22, %v667_v22 }
 0x85e   : > { %960 = vmatmul.mubr.bf16.vlgmr.msra.gmra.mrb[8].mxu1 %v668_v23 }
 0x931   : > { %v724_v25 = vpop.f32.mrb[8].mxu1 }
 0x932   : > { %v725_v0 = vadd.f32 %v892_v24, %v724_v25  ;;  %v961_v26 = vpop.f32.mrb[9].mxu1 }
 0x933   : > { %v727_v27 = vpop.f32.mrb[10].mxu1 }
 0x934   : > { %v962_v28 = vpop.f32.mrb[11].mxu1  ;;  %v730_v29 = vadd.f32 %v725_v0, %v595_v8 }
 0x936   : > { %v733_v30 = vsel %vm239_vm1, %v730_v29, 0.0 }
 0x937   : > { %734 = vadd.xlane.f32.xlu0 %v733_v30 }
 0x9c4   : > { %v735_v31 = vpop.xlane.xlu0 %734 }
 0x9c5   : > { %v736_v32 = vmul.f32 0.03125, %v735_v31 }
 0x9c7   : > { %v737_v33 = vsub.f32 %v730_v29, %v736_v32 }
 0x9c9   : > { %v738_v34 = vmul.f32 %v737_v33, %v737_v33 }
 0x9cb   : > { %v739_v35 = vsel %vm239_vm1, %v738_v34, 0.0 }
 0x9cc   : > { %740 = vadd.xlane.f32.xlu0 %v739_v35 }
 0xa59   : > { %v741_v36 = vpop.xlane.xlu0 %740 }
 0xa5a   : > { %v742_v37 = vmul.f32 0.03125, %v741_v36 }
 0xa5c   : > { %v743_v38 = vadd.f32 1e-05, %v742_v37 }
 0xa5e   : > { %1076 = vrsqrt.f32 %v743_v38 }
 0xa68   : > { %v1077_v39 = vpop.eup %1076 }
 0xa69   : > { %v745_v41 = vmul.f32 %v1077_v39, %v737_v33 }
 0xa6b   : > { %v750_v43 = vmul.f32 %v895_v40, %v745_v41 }
 0xa6d   : > { %v755_v44 = vadd.f32 %v896_v42, %v750_v43 }
 0xa6f   : > { %756 = vst.msk [vmem:[%s214_s22] sm:$0xff] %vm239_vm1, %v755_v44 }
 0xa70   : > { %1177 = shalt.err (!%p1174_p2)
}
 0xa71   : > { %s1178_s21 = scalar_lea.hbm %s1509_s8, 128  ;;  %s1182_s30 = scalar_lea.hbm %s1557_s3, 256 }
 0xa72   : > { %p1179_p13 = scmp.ne.s32.totalorder %s1509_s8, %s1178_s21  ;;  %p1183_p4 = scmp.lt.u32.totalorder %s1509_s8, %s1557_s3 }
 0xa73   : > { %p1184_p7 = scmp.lt.u32.totalorder %s1182_s30, %s1178_s21  ;;  %p1186_p11 = scmp.lt.u32.totalorder %s1178_s21, %s1509_s8 }
 0xa74   : > { %p1180_p6 = pnand %p1179_p13, %p1571_p0 }
 0xa75   : > { %p1185_p8 = por %p1184_p7, %p1183_p4 }
 0xa76   : > { %p1181_p10 = pneg %p1180_p6 }
 0xa77   : > { %p1187_p1 = por %p1186_p11, %p1185_p8 }
 0xa79   : > { %p1188_p3 = pnand %p1187_p1, %p1181_p10 }
 0xa7b   : > { %1191 = shalt.err (!%p1188_p3)
}
 0xa7c   : > { %975 = dma.vmem_to_hbm [thread:$0]  (%p1571_p0), %s1511_s4, 128, %s1509_s8, %s758_s23  }
 0xa7d PF: > { %s783_s24 = sand.u32 1, %s1222_s12   ;;  %p1572_p5 = scmp.ne.s32.totalorder %s1562_s19, 0 }
 0xa7e   : > { %p1573_p9 = scmp.ge.s32.totalorder %s1234_s15, 2  ;;  %s784_s27 = scalar_lea.sflag [#allocation4], %s783_s24 }
 0xa80   : > { %p989_p12 = pnand %p1573_p9, %p1572_p5 }
 0xa82   : > { %1217 = dma.done.wait (!%p989_p12), %s784_s27, 128  }
 0xa83   : > { %1219 = vsyncadd (!%p989_p12), %s784_s27, 4294967168  ;;  %p17_p2 = scmp.ge.s32.totalorder %s1380_s6, 4   ;;  %s1574_s12 = smov %s1226_s13 }
 0xa84   : > { %s1575_s13 = smov %s1230_s14  ;;  %s1576_s14 = smov %s1389_s9 }
 0xa85   : > { %s1577_s15 = smov %s1380_s6  ;;  %19 = sbr.rel (!%p17_p2) target bundleno = 6 (0x6), region = 85 }
 0xa8c   :  { %789 = vsyncpa [#allocation3], 1 }
 0xa8d   :  { %791 = vsyncpa [#allocation3 + $0x1], 1 }
 0xa8e   :  { %792 = vsyncpa [#allocation6], 1 }
 0xa8f   :  { %793 = vsyncpa [#allocation4], 1 }
 0xa90   :  { %795 = vsyncpa [#allocation4 + $0x1], 1 }

</bundles_post_ra>
